<compile_context>
chip_gen: v7x
topology: tpu7x:2x2x1
jax: 0.10.0
libtpu: 0.0.40
codegen_flags: <defaults>
</compile_context>

<pallas_src>
import functools

import numpy as np
import jax
import jax.numpy as jnp
from jax.experimental import pallas as pl
from jax.experimental.pallas import tpu as pltpu


# ----------------------------------------------------------------------------
# small helpers
# ----------------------------------------------------------------------------
def _round_up(x, m):
    return ((x + m - 1) // m) * m


_CP_CLS = getattr(pltpu, "CompilerParams", None) or getattr(pltpu, "TPUCompilerParams", None)


@functools.lru_cache(maxsize=None)
def _vmem_limit_bytes():
    """~75% of physical VMEM: ~96 MiB on v5e/v6e (128 MiB), ~48 MiB on v7x (64 MiB)."""
    try:
        phys = int(pltpu.get_tpu_info().vmem_capacity_bytes)
    except Exception:
        phys = 64 * 1024 * 1024            # conservative fallback (v7x per-TC VMEM)
    return int(min(phys * 3 // 4, 110 * 1024 * 1024))


def _compiler_params(dimension_semantics):
    if _CP_CLS is None:                    # extremely old jax; run with defaults
        return None
    return _CP_CLS(dimension_semantics=tuple(dimension_semantics),
                   vmem_limit_bytes=_vmem_limit_bytes())


@functools.lru_cache(maxsize=None)
def _buffered_one_ok():
    """Probe whether pl.Buffered(1) (single-buffered constant operand) lowers + compiles."""
    if not hasattr(pl, "Buffered"):
        return False
    try:
        def _k(x_ref, o_ref):
            o_ref[...] = x_ref[0:4, :] + 1.0

        fn = pl.pallas_call(
            _k,
            out_shape=jax.ShapeDtypeStruct((8, 128), jnp.float32),
            grid=(2,),
            in_specs=[pl.BlockSpec((8, 128), lambda i: (0, 0),
                                   pipeline_mode=pl.Buffered(1))],
            out_specs=pl.BlockSpec((4, 128), lambda i: (i, 0)),
        )
        jax.jit(fn).lower(jax.ShapeDtypeStruct((8, 128), jnp.float32)).compile()
        return True
    except Exception:
        return False


def _const_spec(block_shape, index_map):
    """BlockSpec for grid-constant operands; single-buffered when supported."""
    if _buffered_one_ok():
        return pl.BlockSpec(block_shape, index_map, pipeline_mode=pl.Buffered(1))
    return pl.BlockSpec(block_shape, index_map)


# ----------------------------------------------------------------------------
# DFT matrix builders (host-side numpy constants fed to the kernels as inputs)
# ----------------------------------------------------------------------------
def fwd_dft_fused(n_in, n_fft, kp):
    """x (.., n_in) zero-padded to n_fft:  x @ M = [Re(rfft(x)) | Im(rfft(x))]; lanes padded to kp."""
    K = n_fft // 2 + 1
    n = np.arange(n_in)[:, None]
    k = np.arange(K)[None, :]
    ang = 2.0 * np.pi * n * k / n_fft
    C = np.zeros((n_in, kp), np.float32)
    S = np.zeros((n_in, kp), np.float32)
    C[:, :K] = np.cos(ang)
    S[:, :K] = -np.sin(ang)                          # Im(rfft) = -(x @ sin)
    return np.concatenate([C, S], axis=1)            # (n_in, 2*kp) float32


def inv_dft_fused(n_fft, kp):
    """[Yr | Yi] (.., 2*kp) @ M = irfft(Y, n_fft)   (even n_fft)."""
    K = n_fft // 2 + 1
    k = np.arange(K)[:, None]
    n = np.arange(n_fft)[None, :]
    ang = 2.0 * np.pi * k * n / n_fft
    c = np.full((K, 1), 2.0)
    c[0] = 1.0
    c[-1] = 1.0
    IC = np.zeros((kp, n_fft), np.float32)
    IS = np.zeros((kp, n_fft), np.float32)
    IC[:K] = c * np.cos(ang) / n_fft
    IS[:K] = -c * np.sin(ang) / n_fft                # y = Yr@Ic - Yi@Is
    return np.concatenate([IC, IS], axis=0)          # (2*kp, n_fft) float32


def centered_ir_mat(n_mag, l_native, l_out, center, n_mag_rows):
    """mag (.., n_mag_rows) @ M = impulse response of native length l_native, embedded so its
    time-0 tap lands at index `center` of an l_out-long row; extra rows/columns are zero."""
    M = np.zeros((n_mag_rows, l_out), np.float32)
    k = np.arange(n_mag)[:, None]
    d = (np.arange(l_out) - center)[None, :]
    valid = (d >= -(l_native // 2)) & (d < l_native - l_native // 2)
    c = np.full((n_mag, 1), 2.0)
    c[0] = 1.0
    c[-1] = 1.0                                      # n_mag == l_native // 2 + 1
    vals = c * np.cos(2.0 * np.pi * k * d / l_native) / l_native
    M[:n_mag] = np.where(valid, vals, 0.0)
    return M


_NEG_PAD = -1.0e4   # exp(-1e4) == 0.0 in float32 -> padded magnitude bins contribute nothing


# ----------------------------------------------------------------------------
# Kernel 1: Mel2Control (Conv1d k=3 -> LeakyReLU -> Conv1d k=3 -> LeakyReLU -> Linear)
# TODO(synk): original Mel2Control also has GroupNorm + a PCmer transformer decoder +
#             weight_norm; those internals are not in the given snippet and are simplified
#             to a deterministic conv/MLP stack with a phase embedding.
# ----------------------------------------------------------------------------
def mel2ctrl_kernel(mel_ref, ph_ref, w1_ref, b1_ref, wp_ref,
                    w2_ref, b2_ref, wo_ref, bo_ref, out_ref):
    T = out_ref.shape[0]
    H = b1_ref.shape[1]
    mp = mel_ref[...]                                                   # (T+2, n_mels)
    # conv k=3 as three tap-sliced accumulated matmuls (no im2col concat copies)
    h = (jnp.dot(mp[0:T], w1_ref[0], preferred_element_type=jnp.float32)
         + jnp.dot(mp[1:T + 1], w1_ref[1], preferred_element_type=jnp.float32)
         + jnp.dot(mp[2:T + 2], w1_ref[2], preferred_element_type=jnp.float32)
         + b1_ref[...])
    h = h + ph_ref[...] * wp_ref[...]                                   # phase embedding
    h = jnp.where(h > 0, h, 0.01 * h)                                   # LeakyReLU
    zrow = jnp.zeros((1, H), jnp.float32)
    hp = jnp.concatenate([zrow, h, zrow], axis=0)                       # (T+2, H)
    h2 = (jnp.dot(hp[0:T], w2_ref[0], preferred_element_type=jnp.float32)
          + jnp.dot(hp[1:T + 1], w2_ref[1], preferred_element_type=jnp.float32)
          + jnp.dot(hp[2:T + 2], w2_ref[2], preferred_element_type=jnp.float32)
          + b2_ref[...])
    h2 = jnp.where(h2 > 0, h2, 0.01 * h2)
    out_ref[...] = jnp.dot(h2, wo_ref[...], preferred_element_type=jnp.float32) + bo_ref[...]


def mel2ctrl_pallas(mel, phase, W1, b1, Wp, W2, b2, Wo, bo):
    B, T, n_mels = mel.shape
    H = b1.shape[1]
    n_out_pad = bo.shape[1]                                             # lane-dense (mult of 128)
    mel_pad = jnp.pad(mel, ((0, 0), (1, 1), (0, 0)))
    return pl.pallas_call(
        mel2ctrl_kernel,
        out_shape=jax.ShapeDtypeStruct((B, T, n_out_pad), jnp.float32),
        grid=(B,),
        in_specs=[
            pl.BlockSpec((None, T + 2, n_mels), lambda b: (b, 0, 0)),
            pl.BlockSpec((None, T, 1), lambda b: (b, 0, 0)),
            _const_spec((3, n_mels, H), lambda b: (0, 0, 0)),
            _const_spec((1, H), lambda b: (0, 0)),
            _const_spec((1, H), lambda b: (0, 0)),
            _const_spec((3, H, H), lambda b: (0, 0, 0)),
            _const_spec((1, H), lambda b: (0, 0)),
            _const_spec((H, n_out_pad), lambda b: (0, 0)),
            _const_spec((1, n_out_pad), lambda b: (0, 0)),
        ],
        out_specs=pl.BlockSpec((None, T, n_out_pad), lambda b: (b, 0, 0)),
        compiler_params=_compiler_params(("parallel",)),
    )(mel_pad, phase, W1, b1, Wp, W2, b2, Wo, bo)


# ----------------------------------------------------------------------------
# Kernel 2: frequency_filter for BOTH the harmonic (combtooth) and noise sources.
# The combtooth sinc is evaluated in-kernel (harmonic slot), the per-frame windowed impulse
# response is built with a centered-irfft matmul + variable-width Hann, and the linear
# convolution runs through fused bf16 real-DFT matmuls with in-place overlap-add.
# ----------------------------------------------------------------------------
def filter_kernel(src_ref, mag_ref, hw_ref, mir_ref, fcs_ref, gcs_ref, ics_ref, out_ref,
                  *, kp, n_chunks, ir_center):
    Fn = src_ref.shape[0]
    L = mir_ref.shape[1]
    is_harm = pl.program_id(1) == 0
    src = src_ref[...]                                                  # (Fn, bs)
    # harmonic slot: src already holds pi*sr*wrapped_phase/(f0+eps) -> sinc; noise slot: raw frames
    safe = jnp.where(src == 0.0, 1.0, src)
    sinc = jnp.where(src == 0.0, 1.0, jnp.sin(safe) / safe)
    frames = jnp.where(is_harm, sinc, src)

    mag = jnp.exp(mag_ref[...])                                         # scale folded in log-domain
    ir = jnp.dot(mag.astype(jnp.bfloat16), mir_ref[...],
                 preferred_element_type=jnp.float32)                    # centered IR (Fn, L)
    d = jax.lax.broadcasted_iota(jnp.int32, (Fn, L), 1).astype(jnp.float32) - float(ir_center)
    hw = hw_ref[...]                                                    # (Fn, 1), clamped >= 1
    win = jnp.where(jnp.abs(d) <= hw, 0.5 + 0.5 * jnp.cos(jnp.pi * d / hw), 0.0)
    ir = (ir * win).astype(jnp.bfloat16)

    # fused real/imag forward DFTs (bf16 MXU, f32 accumulation)
    FrFi = jnp.dot(frames.astype(jnp.bfloat16), fcs_ref[...],
                   preferred_element_type=jnp.float32)                  # (Fn, 2*kp)
    GrGi = jnp.dot(ir, gcs_ref[...], preferred_element_type=jnp.float32)
    Fr, Fi = FrFi[:, :kp], FrFi[:, kp:]
    Gr, Gi = GrGi[:, :kp], GrGi[:, kp:]
    Yr = (Fr * Gr - Fi * Gi).astype(jnp.bfloat16)
    Yi = (Fr * Gi + Fi * Gr).astype(jnp.bfloat16)

    # inverse rDFT per output chunk + row-offset overlap-add straight into out_ref
    out_ref[...] = jnp.zeros_like(out_ref)
    for c in range(n_chunks):
        ic = ics_ref[c]                                                 # (2*kp, bs) bf16
        yc = (jnp.dot(Yr, ic[:kp], preferred_element_type=jnp.float32)
              + jnp.dot(Yi, ic[kp:], preferred_element_type=jnp.float32))   # (Fn, bs)
        out_ref[c:c + Fn, :] = out_ref[c:c + Fn, :] + yc


def fused_frequency_filter_pallas(pt_h, noise, harm_mag_raw, noise_mag_raw, harm_half_width,
                                  *, block_size, noise_scale=1.0 / 128.0, frame_tile=256):
    """Harmonic and noise frequency_filter passes in ONE pallas_call (grid=(B, 2, n_tiles))."""
    B, n_samples = pt_h.shape
    n_frames = harm_mag_raw.shape[1]
    n_mag_h = harm_mag_raw.shape[2]
    n_mag_n = noise_mag_raw.shape[2]
    n_mag_pad = _round_up(max(n_mag_h, n_mag_n), 8)
    L_h = 2 * (n_mag_h - 1)
    L_n = 2 * (n_mag_n - 1)
    L_nat = max(L_h, L_n)
    ir_center = L_nat // 2
    n_chunks = -(-(block_size + L_nat) // block_size)    # FFT length >= linear-conv length
    N = n_chunks * block_size
    Kp = _round_up(N // 2 + 1, 128)                      # lane-dense spectral dim
    L_row = _round_up(L_nat, 128)                        # lane-dense IR row (zero cols beyond L_nat)
    if L_row > N:
        L_row = _round_up(L_nat, 8)

    # frame tiling bounds per-step VMEM (decisive on v7x 64 MiB); halo rows summed in XLA
    if n_frames <= frame_tile:
        tf, n_tiles = n_frames, 1
    else:
        tf = frame_tile
        n_tiles = -(-n_frames // tf)
    nf_pad = tf * n_tiles
    pad_f = nf_pad - n_frames

    def _pad_mag(m, scale):
        m = m + float(np.log(scale))                     # fold scale into the log-magnitudes
        return jnp.pad(m, ((0, 0), (0, pad_f), (0, n_mag_pad - m.shape[2])),
                       constant_values=_NEG_PAD)

    mags = jnp.stack([_pad_mag(harm_mag_raw, 1.0), _pad_mag(noise_mag_raw, noise_scale)], axis=1)

    src = jnp.stack([pt_h.reshape(B, n_frames, block_size),
                     noise.reshape(B, n_frames, block_size)], axis=1)
    if pad_f:
        src = jnp.pad(src, ((0, 0), (0, 0), (0, pad_f), (0, 0)))

    noise_hw = jnp.full((B, n_frames, 1), max(L_n / 2.0, 1.0), jnp.float32)
    hws = jnp.stack([jnp.maximum(harm_half_width.astype(jnp.float32), 1.0), noise_hw], axis=1)
    if pad_f:
        hws = jnp.pad(hws, ((0, 0), (0, 0), (0, pad_f), (0, 0)), constant_values=1.0)

    mirs = jnp.asarray(
        np.stack([centered_ir_mat(n_mag_h, L_h, L_row, ir_center, n_mag_pad),
                  centered_ir_mat(n_mag_n, L_n, L_row, ir_center, n_mag_pad)], axis=0),
        jnp.bfloat16)                                                    # (2, n_mag_pad, L_row)
    FCS = jnp.asarray(fwd_dft_fused(block_size, N, Kp), jnp.bfloat16)    # (bs, 2*Kp)
    GCS = jnp.asarray(fwd_dft_fused(L_row, N, Kp), jnp.bfloat16)         # (L_row, 2*Kp)
    ICS_np = inv_dft_fused(N, Kp)                                        # (2*Kp, N)
    ICS = jnp.asarray(np.transpose(ICS_np.reshape(2 * Kp, n_chunks, block_size), (1, 0, 2)),
                      jnp.bfloat16)                                      # (n_chunks, 2*Kp, bs)

    tile_rows = tf + n_chunks - 1
    # TODO(synk): for very small block_size (<128) the out-spec lane dim is sub-128 (masked vst);
    #             production block_size should be a multiple of 128.
    out = pl.pallas_call(
        functools.partial(filter_kernel, kp=Kp, n_chunks=n_chunks, ir_center=ir_center),
        out_shape=jax.ShapeDtypeStruct((B, 2, n_tiles, tile_rows, block_size), jnp.float32),
        grid=(B, 2, n_tiles),
        in_specs=[
            pl.BlockSpec((None, None, tf, block_size), lambda b, s, t: (b, s, t, 0)),
            pl.BlockSpec((None, None, tf, n_mag_pad), lambda b, s, t: (b, s, t, 0)),
            pl.BlockSpec((None, None, tf, 1), lambda b, s, t: (b, s, t, 0)),
            pl.BlockSpec((None, n_mag_pad, L_row), lambda b, s, t: (s, 0, 0)),
            _const_spec((block_size, 2 * Kp), lambda b, s, t: (0, 0)),
            _const_spec((L_row, 2 * Kp), lambda b, s, t: (0, 0)),
            _const_spec((n_chunks, 2 * Kp, block_size), lambda b, s, t: (0, 0, 0)),
        ],
        out_specs=pl.BlockSpec((None, None, None, tile_rows, block_size),
                               lambda b, s, t: (b, s, t, 0, 0)),
        compiler_params=_compiler_params(("parallel", "parallel", "arbitrary")),
    )(src, mags, hws, mirs, FCS, GCS, ICS)

    if n_tiles == 1:
        acc = out[:, :, 0]                                               # (B, 2, rows, bs)
    else:
        total_rows = nf_pad + n_chunks - 1
        acc = jnp.zeros((B, 2, total_rows, block_size), jnp.float32)
        for t in range(n_tiles):                                         # cheap halo merge in XLA
            acc = acc.at[:, :, t * tf: t * tf + tile_rows].add(out[:, :, t])
    flat = acc.reshape(B, 2, -1)
    sig = flat[:, :, ir_center: ir_center + n_samples]                   # group-delay compensation
    return sig[:, 0], sig[:, 1]                                          # harmonic, filtered noise


# ----------------------------------------------------------------------------
# Kernel 3: STFT all-pass (window -> rFFT -> * exp(i*pi*phase) -> irFFT -> window -> fold),
# framed via two half-frame row views (no overlapped-frame copy), bf16 DFT matmuls,
# overlap-add accumulated into out_ref, frame-tiled with a 1-row halo merged in XLA.
# ----------------------------------------------------------------------------
def allpass_kernel(ra_ref, rb_ref, ph_ref, win_ref, cs_ref, ics_ref, out_ref, *, kp):
    F = ra_ref.shape[0]
    win = win_ref[...]                                                  # (2, bs)
    a = (ra_ref[...] * win[0:1, :]).astype(jnp.bfloat16)                # first frame half
    b = (rb_ref[...] * win[1:2, :]).astype(jnp.bfloat16)                # second frame half
    FrFi = (jnp.dot(a, cs_ref[0], preferred_element_type=jnp.float32)
            + jnp.dot(b, cs_ref[1], preferred_element_type=jnp.float32))   # (F, 2*kp)
    Fr, Fi = FrFi[:, :kp], FrFi[:, kp:]
    ph = jnp.pi * ph_ref[...]
    Ar, Ai = jnp.cos(ph), jnp.sin(ph)
    Yr = (Fr * Ar - Fi * Ai).astype(jnp.bfloat16)
    Yi = (Fr * Ai + Fi * Ar).astype(jnp.bfloat16)
    out_ref[...] = jnp.zeros_like(out_ref)
    for h in range(2):                                                  # the two bs-long halves
        ic = ics_ref[h]                                                 # (2*kp, bs)
        yh = (jnp.dot(Yr, ic[:kp], preferred_element_type=jnp.float32)
              + jnp.dot(Yi, ic[kp:], preferred_element_type=jnp.float32)) * win[h:h + 1, :]
        out_ref[h:h + F, :] = out_ref[h:h + F, :] + yh


def stft_allpass_pallas(harmonic, harmonic_phase, block_size, window, *, frame_tile=256):
    B, n_samples = harmonic.shape
    n_frames = n_samples // block_size
    Fa = n_frames + 1                                                   # overlapped frames
    Kp = _round_up(block_size + 1, 128)
    rows = jnp.pad(harmonic, ((0, 0), (block_size, block_size))).reshape(B, n_frames + 2, block_size)
    rowsA = rows[:, 0:Fa, :]
    rowsB = rows[:, 1:Fa + 1, :]
    phase = jnp.concatenate([harmonic_phase, harmonic_phase[:, -1:, :]], axis=1)   # (B, Fa, bs+1)
    phase = jnp.pad(phase, ((0, 0), (0, 0), (0, Kp - (block_size + 1))))

    if Fa <= frame_tile:
        tf, n_tiles = Fa, 1
    else:
        tf = frame_tile
        n_tiles = -(-Fa // tf)
    Fa_pad = tf * n_tiles
    pad_f = Fa_pad - Fa
    if pad_f:
        rowsA = jnp.pad(rowsA, ((0, 0), (0, pad_f), (0, 0)))
        rowsB = jnp.pad(rowsB, ((0, 0), (0, pad_f), (0, 0)))
        phase = jnp.pad(phase, ((0, 0), (0, pad_f), (0, 0)))

    CS_np = fwd_dft_fused(2 * block_size, 2 * block_size, Kp)           # (2*bs, 2*Kp)
    CS = jnp.asarray(CS_np.reshape(2, block_size, 2 * Kp), jnp.bfloat16)
    ICS_np = inv_dft_fused(2 * block_size, Kp)                          # (2*Kp, 2*bs)
    ICS = jnp.asarray(np.transpose(ICS_np.reshape(2 * Kp, 2, block_size), (1, 0, 2)), jnp.bfloat16)
    win2 = window.reshape(2, block_size).astype(jnp.float32)

    tile_rows = tf + 1
    out = pl.pallas_call(
        functools.partial(allpass_kernel, kp=Kp),
        out_shape=jax.ShapeDtypeStruct((B, n_tiles, tile_rows, block_size), jnp.float32),
        grid=(B, n_tiles),
        in_specs=[
            pl.BlockSpec((None, tf, block_size), lambda b, t: (b, t, 0)),
            pl.BlockSpec((None, tf, block_size), lambda b, t: (b, t, 0)),
            pl.BlockSpec((None, tf, Kp), lambda b, t: (b, t, 0)),
            _const_spec((2, block_size), lambda b, t: (0, 0)),
            _const_spec((2, block_size, 2 * Kp), lambda b, t: (0, 0, 0)),
            _const_spec((2, 2 * Kp, block_size), lambda b, t: (0, 0, 0)),
        ],
        out_specs=pl.BlockSpec((None, None, tile_rows, block_size), lambda b, t: (b, t, 0, 0)),
        compiler_params=_compiler_params(("parallel", "arbitrary")),
    )(rowsA, rowsB, phase, win2, CS, ICS)

    if n_tiles == 1:
        merged = out[:, 0]                                              # (B, Fa+1, bs)
    else:
        merged = jnp.zeros((B, Fa_pad + 1, block_size), jnp.float32)
        for t in range(n_tiles):                                        # 1-row halo merge in XLA
            merged = merged.at[:, t * tf: t * tf + tile_rows].add(out[:, t])
    return merged.reshape(B, -1)[:, block_size: block_size + n_samples]  # == crop [bs:-bs]


# ----------------------------------------------------------------------------
# JAX glue
# ----------------------------------------------------------------------------
def upsample_linear(sig, factor):
    """pc-ddsp upsample: linear interpolate (align_corners) frame-rate -> sample-rate."""
    B, T, _ = sig.shape
    s = jnp.concatenate([sig, sig[:, -1:, :]], axis=1)[..., 0]          # (B, T+1)
    w = jnp.arange(factor, dtype=jnp.float32) / factor
    out = s[:, :-1, None] * (1.0 - w) + s[:, 1:, None] * w              # (B, T, factor)
    return out.reshape(B, T * factor)


class CombSubPallas:
    """Combtooth Subtractive Synthesiser (forward only), Pallas TPU implementation."""

    def __init__(self, sampling_rate, block_size, n_mag_harmonic, n_mag_noise,
                 n_mels=80, hidden=32, seed=0):
        self.sampling_rate = float(sampling_rate)
        self.block_size = int(block_size)
        self.n_mag_harmonic = int(n_mag_harmonic)
        self.n_mag_noise = int(n_mag_noise)
        n = np.arange(2 * block_size)
        hann = 0.5 - 0.5 * np.cos(2.0 * np.pi * n / (2 * block_size))   # periodic hann
        self.window = jnp.asarray(np.sqrt(hann), jnp.float32)
        self.n_out = (block_size + 1) + n_mag_harmonic + n_mag_noise
        self.n_out_pad = _round_up(self.n_out, 128)                     # lane-dense output slab
        self.hidden = hidden

        key = jax.random.PRNGKey(seed)
        ks = jax.random.split(key, 4)

        def init(k, shape, fan_in):
            return (jax.random.normal(k, shape, jnp.float32) / np.sqrt(fan_in)).astype(jnp.float32)

        H = hidden
        # conv weights stored tap-major (3, in, out) for tap-sliced accumulated matmuls
        self.W1 = init(ks[0], (3, n_mels, H), 3 * n_mels)
        self.b1 = jnp.zeros((1, H), jnp.float32)
        self.Wp = init(ks[1], (1, H), 1)
        self.W2 = init(ks[2], (3, H, H), 3 * H)
        self.b2 = jnp.zeros((1, H), jnp.float32)
        Wo = init(ks[3], (H, self.n_out), H)
        self.Wo = jnp.pad(Wo, ((0, 0), (0, self.n_out_pad - self.n_out)))
        self.bo = jnp.zeros((1, self.n_out_pad), jnp.float32)

    def __call__(self, mel_frames, f0_frames, initial_phase=None, infer=True, noise_seed=12345):
        B, n_frames, _ = mel_frames.shape
        bs = self.block_size
        sr = self.sampling_rate

        # upsample f0 to sample rate, integrate to phase
        f0 = upsample_linear(f0_frames, bs)                             # (B, n_samples)
        n_samples = f0.shape[1]
        # TODO(synk): torch uses float64 cumsum when infer=True; TPU path stays float32, so the
        #             wrapped phase loses precision for very long audio.
        x = jnp.cumsum(f0 / sr, axis=1)
        if initial_phase is not None:
            x = x + initial_phase.reshape(B, 1) / (2.0 * np.pi)
        x_wrap = x - jnp.round(x)
        phase_frames = (2.0 * np.pi * x_wrap[:, ::bs])[..., None]       # (B, n_frames, 1)
        # combtooth sinc argument; the sinc itself is evaluated inside the filter kernel
        pt_h = np.pi * sr * x_wrap / (f0 + 0.001)                       # (B, n_samples)

        # Mel2Control (Pallas); output lanes padded to a multiple of 128, sliced here
        ctrl = mel2ctrl_pallas(mel_frames, phase_frames,
                               self.W1, self.b1, self.Wp, self.W2, self.b2, self.Wo, self.bo)
        harmonic_phase = ctrl[:, :, : bs + 1]
        harm_mag_raw = ctrl[:, :, bs + 1: bs + 1 + self.n_mag_harmonic]
        noise_mag_raw = ctrl[:, :, bs + 1 + self.n_mag_harmonic:
                             bs + 1 + self.n_mag_harmonic + self.n_mag_noise]

        # TODO(synk): torch.rand_like uses the torch RNG stream; uniform noise comes from
        #             jax.random here (in-kernel pltpu.prng_* would also remove this HBM
        #             round-trip but does not lower under the interpret fallback).
        noise = jax.random.uniform(jax.random.PRNGKey(noise_seed), (B, n_samples),
                                   jnp.float32, minval=-1.0, maxval=1.0)

        # harmonic (combtooth) + noise spectral filtering in one fused, frame-tiled Pallas call
        harm_hw = 1.5 * sr / (f0_frames + 0.001)                        # (B, n_frames, 1)
        harmonic, noise_f = fused_frequency_filter_pallas(
            pt_h, noise, harm_mag_raw, noise_mag_raw, harm_hw, block_size=bs)

        # STFT all-pass + fold (Pallas)
        harmonic = stft_allpass_pallas(harmonic, harmonic_phase, bs, self.window)

        signal = harmonic + noise_f
        return signal, phase_frames, (harmonic, noise_f)


if __name__ == "__main__":
    B, n_frames, n_mels = 2, 8, 16
    block_size = 16
    sampling_rate = 16000
    n_mag_harmonic, n_mag_noise = 17, 9

    key = jax.random.PRNGKey(0)
    k1, k2 = jax.random.split(key)
    mel_frames = jax.random.normal(k1, (B, n_frames, n_mels), jnp.float32)
    f0_frames = 100.0 + 300.0 * jax.random.uniform(k2, (B, n_frames, 1), jnp.float32)

    model = CombSubPallas(sampling_rate, block_size, n_mag_harmonic, n_mag_noise, n_mels=n_mels)
    signal, phase_frames, (harmonic, noise) = model(mel_frames, f0_frames, infer=True)
    jax.block_until_ready((signal, phase_frames, harmonic, noise))

    assert signal.shape == (B, n_frames * block_size)
    assert phase_frames.shape == (B, n_frames, 1)
    assert harmonic.shape == (B, n_frames * block_size)
    assert noise.shape == (B, n_frames * block_size)
    assert bool(jnp.all(jnp.isfinite(signal)))
    print("KERNEL_OK")
</pallas_src>

<mosaic_0001>
module attributes {stable_mosaic.version = 11 : i64} {
  func.func @mel2ctrl_kernel(%arg0: i32, %arg1: memref<1x10x16xf32, #tpu.memory_space<vmem>>, %arg2: memref<1x8x1xf32, #tpu.memory_space<vmem>>, %arg3: memref<3x16x32xf32, #tpu.memory_space<vmem>>, %arg4: memref<1x32xf32, #tpu.memory_space<vmem>>, %arg5: memref<1x32xf32, #tpu.memory_space<vmem>>, %arg6: memref<3x32x32xf32, #tpu.memory_space<vmem>>, %arg7: memref<1x32xf32, #tpu.memory_space<vmem>>, %arg8: memref<32x128xf32, #tpu.memory_space<vmem>>, %arg9: memref<1x128xf32, #tpu.memory_space<vmem>>, %arg10: memref<1x8x128xf32, #tpu.memory_space<vmem>>) attributes {dimension_semantics = [#tpu.dimension_semantics<parallel>], iteration_bounds = array<i64: 2>, scalar_prefetch = 0 : i64, scratch_operands = 0 : i64, tpu.core_type = #tpu.core_type<tc>, window_params = [{transform_indices = @transform_0, window_bounds = array<i64: 1, 10, 16>}, {transform_indices = @transform_1, window_bounds = array<i64: 1, 8, 1>}, {pipeline_mode = #tpu.pipeline_mode<synchronous>, transform_indices = @transform_2, window_bounds = array<i64: 3, 16, 32>}, {pipeline_mode = #tpu.pipeline_mode<synchronous>, transform_indices = @transform_3, window_bounds = array<i64: 1, 32>}, {pipeline_mode = #tpu.pipeline_mode<synchronous>, transform_indices = @transform_4, window_bounds = array<i64: 1, 32>}, {pipeline_mode = #tpu.pipeline_mode<synchronous>, transform_indices = @transform_5, window_bounds = array<i64: 3, 32, 32>}, {pipeline_mode = #tpu.pipeline_mode<synchronous>, transform_indices = @transform_6, window_bounds = array<i64: 1, 32>}, {pipeline_mode = #tpu.pipeline_mode<synchronous>, transform_indices = @transform_7, window_bounds = array<i64: 32, 128>}, {pipeline_mode = #tpu.pipeline_mode<synchronous>, transform_indices = @transform_8, window_bounds = array<i64: 1, 128>}, {transform_indices = @transform_9, window_bounds = array<i64: 1, 8, 128>}]} {
    %c0 = arith.constant 0 : index
    %c0_0 = arith.constant 0 : index
    %c0_1 = arith.constant 0 : index
    %0 = vector.load %arg1[%c0, %c0_0, %c0_1] : memref<1x10x16xf32, #tpu.memory_space<vmem>>, vector<1x10x16xf32>
    %1 = vector.shape_cast %0 : vector<1x10x16xf32> to vector<10x16xf32>
    %2 = vector.extract_strided_slice %1 {offsets = [0, 0], sizes = [8, 16], strides = [1, 1]} : vector<10x16xf32> to vector<8x16xf32>
    %c0_2 = arith.constant 0 : index
    %c0_3 = arith.constant 0 : index
    %c0_4 = arith.constant 0 : index
    %3 = vector.load %arg3[%c0_2, %c0_3, %c0_4] : memref<3x16x32xf32, #tpu.memory_space<vmem>>, vector<1x16x32xf32>
    %4 = vector.shape_cast %3 : vector<1x16x32xf32> to vector<16x32xf32>
    %cst = arith.constant dense<0.000000e+00> : vector<8x32xf32>
    %5 = tpu.matmul %2, %4, %cst {dimension_numbers = #tpu.dot_dimension_numbers<[1], [0], [0], [1], [0, 0, 1, 1], [], []>} : vector<8x16xf32>, vector<16x32xf32>, vector<8x32xf32> -> vector<8x32xf32>
    %6 = vector.extract_strided_slice %1 {offsets = [1, 0], sizes = [8, 16], strides = [1, 1]} : vector<10x16xf32> to vector<8x16xf32>
    %c1 = arith.constant 1 : index
    %c0_5 = arith.constant 0 : index
    %c0_6 = arith.constant 0 : index
    %7 = vector.load %arg3[%c1, %c0_5, %c0_6] : memref<3x16x32xf32, #tpu.memory_space<vmem>>, vector<1x16x32xf32>
    %8 = vector.shape_cast %7 : vector<1x16x32xf32> to vector<16x32xf32>
    %cst_7 = arith.constant dense<0.000000e+00> : vector<8x32xf32>
    %9 = tpu.matmul %6, %8, %cst_7 {dimension_numbers = #tpu.dot_dimension_numbers<[1], [0], [0], [1], [0, 0, 1, 1], [], []>} : vector<8x16xf32>, vector<16x32xf32>, vector<8x32xf32> -> vector<8x32xf32>
    %10 = arith.addf %5, %9 : vector<8x32xf32>
    %11 = vector.extract_strided_slice %1 {offsets = [2, 0], sizes = [8, 16], strides = [1, 1]} : vector<10x16xf32> to vector<8x16xf32>
    %c2 = arith.constant 2 : index
    %c0_8 = arith.constant 0 : index
    %c0_9 = arith.constant 0 : index
    %12 = vector.load %arg3[%c2, %c0_8, %c0_9] : memref<3x16x32xf32, #tpu.memory_space<vmem>>, vector<1x16x32xf32>
    %13 = vector.shape_cast %12 : vector<1x16x32xf32> to vector<16x32xf32>
    %cst_10 = arith.constant dense<0.000000e+00> : vector<8x32xf32>
    %14 = tpu.matmul %11, %13, %cst_10 {dimension_numbers = #tpu.dot_dimension_numbers<[1], [0], [0], [1], [0, 0, 1, 1], [], []>} : vector<8x16xf32>, vector<16x32xf32>, vector<8x32xf32> -> vector<8x32xf32>
    %15 = arith.addf %10, %14 : vector<8x32xf32>
    %c0_11 = arith.constant 0 : index
    %c0_12 = arith.constant 0 : index
    %16 = vector.load %arg4[%c0_11, %c0_12] : memref<1x32xf32, #tpu.memory_space<vmem>>, vector<1x32xf32>
    %17 = vector.broadcast %16 : vector<1x32xf32> to vector<8x32xf32>
    %18 = arith.addf %15, %17 : vector<8x32xf32>
    %c0_13 = arith.constant 0 : index
    %c0_14 = arith.constant 0 : index
    %c0_15 = arith.constant 0 : index
    %19 = vector.load %arg2[%c0_13, %c0_14, %c0_15] : memref<1x8x1xf32, #tpu.memory_space<vmem>>, vector<1x8x1xf32>
    %20 = vector.shape_cast %19 : vector<1x8x1xf32> to vector<8x1xf32>
    %c0_16 = arith.constant 0 : index
    %c0_17 = arith.constant 0 : index
    %21 = vector.load %arg5[%c0_16, %c0_17] : memref<1x32xf32, #tpu.memory_space<vmem>>, vector<1x32xf32>
    %22 = vector.broadcast %20 : vector<8x1xf32> to vector<8x32xf32>
    %23 = vector.broadcast %21 : vector<1x32xf32> to vector<8x32xf32>
    %24 = arith.mulf %22, %23 : vector<8x32xf32>
    %25 = arith.addf %18, %24 : vector<8x32xf32>
    %cst_18 = arith.constant 0.000000e+00 : f32
    %26 = vector.broadcast %cst_18 : f32 to vector<8x32xf32>
    %27 = arith.cmpf ogt, %25, %26 : vector<8x32xf32>
    %cst_19 = arith.constant 0.00999999977 : f32
    %28 = vector.broadcast %cst_19 : f32 to vector<8x32xf32>
    %29 = arith.mulf %28, %25 : vector<8x32xf32>
    %30 = arith.select %27, %25, %29 : vector<8x32xi1>, vector<8x32xf32>
    %cst_20 = arith.constant 0.000000e+00 : f32
    %31 = vector.broadcast %cst_20 : f32 to vector<1x32xf32>
    %32 = tpu.concatenate %31, %30, %31 in 0 : vector<1x32xf32>, vector<8x32xf32>, vector<1x32xf32> -> vector<10x32xf32>
    %33 = vector.extract_strided_slice %32 {offsets = [0, 0], sizes = [8, 32], strides = [1, 1]} : vector<10x32xf32> to vector<8x32xf32>
    %c0_21 = arith.constant 0 : index
    %c0_22 = arith.constant 0 : index
    %c0_23 = arith.constant 0 : index
    %34 = vector.load %arg6[%c0_21, %c0_22, %c0_23] : memref<3x32x32xf32, #tpu.memory_space<vmem>>, vector<1x32x32xf32>
    %35 = vector.shape_cast %34 : vector<1x32x32xf32> to vector<32x32xf32>
    %cst_24 = arith.constant dense<0.000000e+00> : vector<8x32xf32>
    %36 = tpu.matmul %33, %35, %cst_24 {dimension_numbers = #tpu.dot_dimension_numbers<[1], [0], [0], [1], [0, 0, 1, 1], [], []>} : vector<8x32xf32>, vector<32x32xf32>, vector<8x32xf32> -> vector<8x32xf32>
    %37 = vector.extract_strided_slice %32 {offsets = [1, 0], sizes = [8, 32], strides = [1, 1]} : vector<10x32xf32> to vector<8x32xf32>
    %c1_25 = arith.constant 1 : index
    %c0_26 = arith.constant 0 : index
    %c0_27 = arith.constant 0 : index
    %38 = vector.load %arg6[%c1_25, %c0_26, %c0_27] : memref<3x32x32xf32, #tpu.memory_space<vmem>>, vector<1x32x32xf32>
    %39 = vector.shape_cast %38 : vector<1x32x32xf32> to vector<32x32xf32>
    %cst_28 = arith.constant dense<0.000000e+00> : vector<8x32xf32>
    %40 = tpu.matmul %37, %39, %cst_28 {dimension_numbers = #tpu.dot_dimension_numbers<[1], [0], [0], [1], [0, 0, 1, 1], [], []>} : vector<8x32xf32>, vector<32x32xf32>, vector<8x32xf32> -> vector<8x32xf32>
    %41 = arith.addf %36, %40 : vector<8x32xf32>
    %42 = vector.extract_strided_slice %32 {offsets = [2, 0], sizes = [8, 32], strides = [1, 1]} : vector<10x32xf32> to vector<8x32xf32>
    %c2_29 = arith.constant 2 : index
    %c0_30 = arith.constant 0 : index
    %c0_31 = arith.constant 0 : index
    %43 = vector.load %arg6[%c2_29, %c0_30, %c0_31] : memref<3x32x32xf32, #tpu.memory_space<vmem>>, vector<1x32x32xf32>
    %44 = vector.shape_cast %43 : vector<1x32x32xf32> to vector<32x32xf32>
    %cst_32 = arith.constant dense<0.000000e+00> : vector<8x32xf32>
    %45 = tpu.matmul %42, %44, %cst_32 {dimension_numbers = #tpu.dot_dimension_numbers<[1], [0], [0], [1], [0, 0, 1, 1], [], []>} : vector<8x32xf32>, vector<32x32xf32>, vector<8x32xf32> -> vector<8x32xf32>
    %46 = arith.addf %41, %45 : vector<8x32xf32>
    %c0_33 = arith.constant 0 : index
    %c0_34 = arith.constant 0 : index
    %47 = vector.load %arg7[%c0_33, %c0_34] : memref<1x32xf32, #tpu.memory_space<vmem>>, vector<1x32xf32>
    %48 = vector.broadcast %47 : vector<1x32xf32> to vector<8x32xf32>
    %49 = arith.addf %46, %48 : vector<8x32xf32>
    %cst_35 = arith.constant 0.000000e+00 : f32
    %50 = vector.broadcast %cst_35 : f32 to vector<8x32xf32>
    %51 = arith.cmpf ogt, %49, %50 : vector<8x32xf32>
    %cst_36 = arith.constant 0.00999999977 : f32
    %52 = vector.broadcast %cst_36 : f32 to vector<8x32xf32>
    %53 = arith.mulf %52, %49 : vector<8x32xf32>
    %54 = arith.select %51, %49, %53 : vector<8x32xi1>, vector<8x32xf32>
    %c0_37 = arith.constant 0 : index
    %c0_38 = arith.constant 0 : index
    %55 = vector.load %arg8[%c0_37, %c0_38] : memref<32x128xf32, #tpu.memory_space<vmem>>, vector<32x128xf32>
    %cst_39 = arith.constant dense<0.000000e+00> : vector<8x128xf32>
    %56 = tpu.matmul %54, %55, %cst_39 {dimension_numbers = #tpu.dot_dimension_numbers<[1], [0], [0], [1], [0, 0, 1, 1], [], []>} : vector<8x32xf32>, vector<32x128xf32>, vector<8x128xf32> -> vector<8x128xf32>
    %c0_40 = arith.constant 0 : index
    %c0_41 = arith.constant 0 : index
    %57 = vector.load %arg9[%c0_40, %c0_41] : memref<1x128xf32, #tpu.memory_space<vmem>>, vector<1x128xf32>
    %58 = vector.broadcast %57 : vector<1x128xf32> to vector<8x128xf32>
    %59 = arith.addf %56, %58 : vector<8x128xf32>
    %c0_42 = arith.constant 0 : index
    %c0_43 = arith.constant 0 : index
    %c0_44 = arith.constant 0 : index
    %60 = vector.load %arg10[%c0_42, %c0_43, %c0_44] : memref<1x8x128xf32, #tpu.memory_space<vmem>>, vector<1x8x128xf32>
    %61 = vector.shape_cast %60 : vector<1x8x128xf32> to vector<8x128xf32>
    %62 = vector.shape_cast %59 : vector<8x128xf32> to vector<1x8x128xf32>
    tpu.vector_store %arg10[%c0_42, %c0_43, %c0_44], %62 {strides = array<i32>} : memref<1x8x128xf32, #tpu.memory_space<vmem>>, vector<1x8x128xf32>,
    return
  }
  func.func @transform_0(%arg0: i32) -> (i32, i32, i32) {
    %c0_i32 = arith.constant 0 : i32
    %c0_i32_0 = arith.constant 0 : i32
    %c0_i32_1 = arith.constant 0 : i32
    return %arg0, %c0_i32, %c0_i32_0 : i32, i32, i32
  }
  func.func @transform_1(%arg0: i32) -> (i32, i32, i32) {
    %c0_i32 = arith.constant 0 : i32
    %c0_i32_0 = arith.constant 0 : i32
    %c0_i32_1 = arith.constant 0 : i32
    return %arg0, %c0_i32, %c0_i32_0 : i32, i32, i32
  }
  func.func @transform_2(%arg0: i32) -> (i32, i32, i32) {
    %c0_i32 = arith.constant 0 : i32
    %c0_i32_0 = arith.constant 0 : i32
    %c0_i32_1 = arith.constant 0 : i32
    %c0_i32_2 = arith.constant 0 : i32
    return %c0_i32, %c0_i32_0, %c0_i32_1 : i32, i32, i32
  }
  func.func @transform_3(%arg0: i32) -> (i32, i32) {
    %c0_i32 = arith.constant 0 : i32
    %c0_i32_0 = arith.constant 0 : i32
    %c0_i32_1 = arith.constant 0 : i32
    return %c0_i32, %c0_i32_0 : i32, i32
  }
  func.func @transform_4(%arg0: i32) -> (i32, i32) {
    %c0_i32 = arith.constant 0 : i32
    %c0_i32_0 = arith.constant 0 : i32
    %c0_i32_1 = arith.constant 0 : i32
    return %c0_i32, %c0_i32_0 : i32, i32
  }
  func.func @transform_5(%arg0: i32) -> (i32, i32, i32) {
    %c0_i32 = arith.constant 0 : i32
    %c0_i32_0 = arith.constant 0 : i32
    %c0_i32_1 = arith.constant 0 : i32
    %c0_i32_2 = arith.constant 0 : i32
    return %c0_i32, %c0_i32_0, %c0_i32_1 : i32, i32, i32
  }
  func.func @transform_6(%arg0: i32) -> (i32, i32) {
    %c0_i32 = arith.constant 0 : i32
    %c0_i32_0 = arith.constant 0 : i32
    %c0_i32_1 = arith.constant 0 : i32
    return %c0_i32, %c0_i32_0 : i32, i32
  }
  func.func @transform_7(%arg0: i32) -> (i32, i32) {
    %c0_i32 = arith.constant 0 : i32
    %c0_i32_0 = arith.constant 0 : i32
    %c0_i32_1 = arith.constant 0 : i32
    return %c0_i32, %c0_i32_0 : i32, i32
  }
  func.func @transform_8(%arg0: i32) -> (i32, i32) {
    %c0_i32 = arith.constant 0 : i32
    %c0_i32_0 = arith.constant 0 : i32
    %c0_i32_1 = arith.constant 0 : i32
    return %c0_i32, %c0_i32_0 : i32, i32
  }
  func.func @transform_9(%arg0: i32) -> (i32, i32, i32) {
    %c0_i32 = arith.constant 0 : i32
    %c0_i32_0 = arith.constant 0 : i32
    %c0_i32_1 = arith.constant 0 : i32
    return %arg0, %c0_i32, %c0_i32_0 : i32, i32, i32
  }
}

</mosaic_0001>

<bundles_post_ra>
// kernel: tpu_custom_call.1
= control target key start
LH: loop header
LB: loop body
LE: loop exit
PB: predicated region body
PF: predicated region fallthrough
CT: control target
= control target key end

     0   :  { %s1650_s0 = inlined_call_operand.vmem [shape: f32[2,10,16], index: 0, kind: input, shape index: {}]   ;;  %s1651_s1 = inlined_call_operand.vmem [shape: f32[2,8,1], index: 1, kind: input, shape index: {}]   ;;  %s1652_s2 = inlined_call_operand.vmem [shape: f32[3,16,32], index: 2, kind: input, shape index: {}]   ;;  %s1653_s3 = inlined_call_operand.vmem [shape: f32[1,32], index: 3, kind: input, shape index: {}]   ;;  %s1654_s4 = inlined_call_operand.vmem [shape: f32[1,32], index: 4, kind: input, shape index: {}]   ;;  %s1655_s5 = inlined_call_operand.hbm [shape: f32[3,32,32], index: 5, kind: input, shape index: {}]   ;;  %s1656_s6 = inlined_call_operand.vmem [shape: f32[1,32], index: 6, kind: input, shape index: {}]   ;;  %s1657_s7 = inlined_call_operand.vmem [shape: f32[32,128], index: 7, kind: input, shape index: {}]   ;;  %s1658_s8 = inlined_call_operand.vmem [shape: f32[1,128], index: 8, kind: input, shape index: {}]   ;;  %s1659_s9 = inlined_call_operand.hbm [shape: f32[2,8,128], index: 9, kind: output, shape index: {}]  }
   0x1   :  { %1664 = sst [smem:[#allocation10_spill]] %s1655_s5 }
   0x2   :  { %14 = vsyncpa [#allocation3], 0 }
   0x3   :  { %15 = vsyncpa [#allocation4], 0 }
   0x4   :  { %17 = vsyncpa [#allocation4 + $0x1], 0  ;;  %s1434_s30 = smov 0   ;;  %s1436_s10 = smov 0  }
   0x5   :  { %s1438_s11 = smov 0   ;;  %s1440_s12 = smov 0  }
   0x6 LB: > { %1665 = sst [smem:[#allocation8_spill]] %s1370_s11  ;;  %s1455_s13 = sadd.s32 4294967295, %s1374_s12   ;;  %s1374_s12 = sphi %s1440_s12, %s1681_s12   ;;  %s1370_s11 = sphi %s1438_s11, %s1678_s11   ;;  %s1366_s10 = sphi %s1436_s10, %s1680_s10   ;;  %s1362_s30 = sphi %s1434_s30, %s1679_s30  }
   0x7   : > { %s1066_s14 = sadd.s32 4294967294, %s1374_s12   ;;  %s1459_s15 = sadd.s32 1, %s1374_s12  }
   0x8   : > { %s229_s16 = sadd.s32 1, %s1370_s11  ;;  %s226_s17 = ssub.s32 %s1374_s12, %s1459_s15 }
   0x9   : > { %p239_p0 = scmp.ne.s32.totalorder %s1370_s11, %s1366_s10  ;;  %p227_p1 = scmp.eq.s32.totalorder %s226_s17, 0 }
   0xa   : > { %p240_p2 = scmp.eq.s32.totalorder %s1455_s13, 1  ;;  %p245_p3 = scmp.ne.s32.totalorder %s1366_s10, %s1362_s30 }
   0xb   : > { %p246_p4 = scmp.eq.s32.totalorder %s1066_s14, 1  ;;  %p1067_p7 = scmp.ge.s32.totalorder %s1374_s12, 1 }
   0xc   : > { %s1470_s18 = scalar_select %p227_p1, %s1370_s11, %s229_s16  }
   0xd   : > { %p1472_p5 = por %p240_p2, %p239_p0  ;;  %p1476_p6 = por %p246_p4, %p245_p3 }
   0xe   : > { %1666 = sst [smem:[#allocation9_spill]] %s1470_s18  ;;  %p253_p8 = scmp.lt.s32.totalorder %s1374_s12, 3 }
   0xf   : > { %s1667_s19 = scalar_select %p1472_p5, 1, 0 }
  0x10   : > { %s1668_s20 = scalar_select %p1476_p6, 1, 0 }
  0x11   : > { %p1660_p9 = scmp.eq.s32.totalorder %s1455_s13, 0  ;;  %p1483_p10 = pnand %p1067_p7, %p253_p8 }
  0x12   : > { %s1376_s22 = smov [#allocation2]   ;;  %s1671_s5 = sld [smem:[#allocation10_spill]] }
  0x13   : > { %s1669_s21 = scalar_select %p1483_p10, 1, 0 }
  0x14   : > { %s274_s23 = sshll.u32 %s1376_s22, 4  ;;  %p1229_p11 = pneg %p1483_p10  ;;  %s275_s23 = int_to_ptr.vmem [resolvable:$true] %s274_s23 }
  0x16   : > { %p1491_p12 = pnand %p1660_p9, %p1229_p11 }
  0x18   : > { %s1280_s27 = scalar_lea.hbm %s1671_s5, 1536  ;;  %p1282_p0 = pneg %p1491_p12 }
  0x19   : > { %p1281_p13 = scmp.ne.s32.totalorder %s1671_s5, %s1280_s27  ;;  %p1287_p3 = scmp.lt.u32.totalorder %s1280_s27, %s1671_s5 }
  0x1b   : > { %p1283_p1 = pnand %p1282_p0, %p1281_p13 }
  0x1d   : > { %p1284_p2 = pneg %p1283_p1 }
  0x1f   : > { %p1289_p4 = pnand %p1287_p3, %p1284_p2 }
  0x21   : > { %1292 = shalt.err (!%p1289_p4)
}
  0x22   : > { %s1293_s17 = scalar_lea.vmem %s275_s23, 1536  ;;  %p1301_p9 = scmp.lt.s32.totalorder %s275_s23, %s275_s23 }
  0x23   : > { %p1294_p7 = scmp.ne.s32.totalorder %s275_s23, %s1293_s17  ;;  %p1302_p6 = scmp.lt.s32.totalorder %s1293_s17, %s1293_s17 }
  0x25   : > { %p1296_p8 = pnand %p1294_p7, %p1282_p0  ;;  %p1303_p5 = por %p1302_p6, %p1301_p9 }
  0x27   : > { %p1297_p11 = pneg %p1296_p8 }
  0x29   : > { %p1304_p10 = pnand %p1303_p5, %p1297_p11 }
  0x2b   : > { %1307 = shalt.err (!%p1304_p10)
}
  0x2c   : > { %s1377_s22 = smov 128   ;;  %s1378_s25 = smov 8  }
  0x2d   : > { %1232 = dma.hbm_to_vmem [thread:$0]  (!%p1491_p12), %s1671_s5, 1536, %s275_s23, [#allocation3], %s1377_s22, %s1377_s22, %s1378_s25  }
  0x2e   : > { %p1672_p13 = scmp.ne.s32.totalorder %s1669_s21, 0 }
  0x2f   : > { %p1673_p1 = scmp.eq.s32.totalorder (!%p1672_p13), %s1455_s13, 0 }
  0x30   : > { %314 = sbr.rel (%p1672_p13) target bundleno = 752 (0x2f0), region = 56 }
  0x37   : > { %1353 = dma.done.wait (%p1673_p1), [#allocation3], 1536   ;;  %p1674_p0 = pmov %p1673_p1 }
  0x38   : > { %p354_p5 = scmp.lt.s32.totalorder %s1455_s13, 1  ;;  %v1379_v0 = vmov 0.0|0.0   ;;  %vm1380_vm0 = vmmov 0   ;;  %v1381_v1 = vmov 0.0   ;;  %v1382_v2 = vmov 0   ;;  %v1076_v3 = vld [vmem:[%s1652_s2 + $0x10] sm:$0xff] }
  0x39   : > { %1355 = vsyncadd (%p1674_p0), [#allocation3], 4294965760  ;;  %1190 = vmatprep.subr.bf16.mxu0 %v1379_v0  ;;  %1193 = vmatprep.subr.bf16.mxu1 %v1379_v0  ;;  %v1077_v4 = vld [vmem:[%s1652_s2 + $0x18] sm:$0xff]  ;;  %v365_v5 = vld [vmem:[%s1652_s2] sm:$0xff]  ;;  %vm372_vm1 = vcmask 1046528   ;;  %vm376_vm2 = vcmask 130048  }
  0x3a   : > { %1129 = vmatprep.mubr.msk.f32.mxu0 %vm1380_vm0, %v1381_v1  ;;  %s355_s21 = scalar_select %p354_p5, %s1455_s13, 1  ;;  %1136 = vmatprep.mubr.msk.f32.mxu1 %vm1380_vm0, %v1381_v1  ;;  %v1191_v6 = vpack.c.bf16 %v1077_v4, %v1076_v3  ;;  %v366_v7 = vld [vmem:[%s1652_s2 + $0x8] sm:$0xff]  ;;  %v1080_v13 = vld [vmem:[%s1652_s2 + $0x20] sm:$0xff]  ;;  %vm524_vm3 = vcmask 1045504   ;;  %v635_v27 = vld [vmem:[#allocation2 + $0x10] sm:$0xff]  ;;  %vm630_vm5 = vcmask 1040384  }
  0x3b   : > { %1279 = vset.pattern.permute.xlu0 %v1382_v2  ;;  %v1194_v10 = vpack.c.bf16 %v366_v7, %v365_v5  ;;  %v1081_v14 = vld [vmem:[%s1652_s2 + $0x28] sm:$0xff]  ;;  %v633_v21 = vld [vmem:[#allocation2] sm:$0xff]  ;;  %v636_v28 = vld [vmem:[#allocation2 + $0x18] sm:$0xff]  ;;  %vm647_vm6 = vcmask 261120   ;;  %s351_s29 = sand.u32 1, %s1366_s10   ;;  %s1092_s16 = sshll.u32 %s1455_s13, 7 }
  0x3c   : > { %s1095_s23 = sshll.u32 %s355_s21, 4  ;;  %s1075_s24 = sshll.u32 %s355_s21, 3  ;;  %1192 = vmatpush3.bf16.msra.mxu0 %v1191_v6  ;;  %v1197_v17 = vpack.c.bf16 %v1081_v14, %v1080_v13  ;;  %v634_v22 = vld [vmem:[#allocation2 + $0x8] sm:$0xff]  ;;  %v638_v24 = vld [vmem:[#allocation2 + $0x20] sm:$0xff]  ;;  %v1209_v29 = vpack.c.bf16 %v636_v28, %v635_v27  ;;  %v640_v30 = vld [vmem:[#allocation2 + $0x30] sm:$0xff] }
  0x3d   : > { %s358_s14 = scalar_lea.vmem %s1650_s0, %s1095_s23  ;;  %s362_s22 = scalar_lea.vmem %s1651_s1, %s1075_s24  ;;  %1195 = vmatpush3.bf16.msra.mxu1 %v1194_v10  ;;  %1196 = vmatprep.subr.bf16.mxu0 %v1379_v0  ;;  %v1206_v23 = vpack.c.bf16 %v634_v22, %v633_v21  ;;  %v639_v25 = vld [vmem:[#allocation2 + $0x28] sm:$0xff]  ;;  %v641_v31 = vld [vmem:[#allocation2 + $0x38] sm:$0xff]  ;;  %v1084_v38 = vld [vmem:[%s1654_s4] ss:$0 sm:$0xff] }
  0x3e   : > { %v363_v8 = vld [vmem:[%s358_s14] sm:$0xff]  ;;  %v364_v9 = vld [vmem:[%s358_s14 + $0x8] sm:$0x3]  ;;  %1199 = vmatprep.subr.bf16.mxu1 %v1379_v0  ;;  %v1200_v26 = vpack.c.bf16 %v639_v25, %v638_v24  ;;  %v1203_v32 = vpack.c.bf16 %v641_v31, %v640_v30  ;;  %v795_v57 = vld [vmem:[#allocation2 + $0x50] sm:$0xff]  ;;  %s1072_s11 = sshll.u32 %s351_s29, 3  ;;  %s1608_s28 = scalar_lea.hbm %s1659_s9, %s1092_s16 }
  0x3f   : > { %v373_v11 = vrot.slane %v363_v8, 1  ;;  %v374_v12 = vrot.slane %v364_v9, 1  ;;  %v609_v15 = vld [vmem:[%s362_s22] sm:$0xff]  ;;  %v526_v16 = vrot.slane %v364_v9, 2  ;;  %v525_v18 = vrot.slane %v363_v8, 2  ;;  %v794_v51 = vld [vmem:[#allocation2 + $0x48] sm:$0xff] }
  0x40   : > { %613 = vperm.xlu0 %1279, %v609_v15   ;;  %1137 = vmatmul.mubr.msk.f32.vlgmr.msra.gmra.mrb[0].mxu1 %vm376_vm2, %v363_v8  ;;  %v1083_v41 = vld [vmem:[%s1653_s3] ss:$0 sm:$0xff]  ;;  %v796_v58 = vld [vmem:[#allocation2 + $0x58] sm:$0xff]  ;;  %v885_v3 = vld [vmem:[%s1657_s7 + $0x8] sm:$0xff]  ;;  %s353_s17 = scalar_lea.vmem [#allocation5], %s1072_s11  ;;  %s970_s21 = scalar_lea.sflag [#allocation4], %s351_s29 }
  0x41   : > { %v375_v19 = vsel %vm372_vm1, %v373_v11, %v374_v12  ;;  %v527_v20 = vsel %vm524_vm3, %v525_v18, %v526_v16  ;;  %1154 = vmatprep.mubr.msk.f32.mxu1 %vm1380_vm0, %v1381_v1  ;;  %1201 = vmatpush3.bf16.msra.mxu1 %v1200_v26  ;;  %v793_v50 = vld [vmem:[#allocation2 + $0x40] sm:$0xff]  ;;  %v1215_v60 = vpack.c.bf16 %v796_v58, %v795_v57  ;;  %v887_v5 = vld [vmem:[%s1657_s7 + $0x18] sm:$0xff]  ;;  %s983_s22 = sshll.u32 %s353_s17, 4  ;;  %p1675_p9 = scmp.ne.s32.totalorder %s1667_s19, 0  ;;  %s1610_s22 = int_to_ptr.vmem [resolvable:$true] %s983_s22 }
  0x42   : > { %1130 = vmatmul.mubr.msk.f32.vlgmr.msra.gmra.mrb[0].mxu0 %vm376_vm2, %v375_v19  ;;  %1202 = vmatprep.subr.bf16.mxu1 %v1379_v0  ;;  %v1212_v56 = vpack.c.bf16 %v794_v51, %v793_v50  ;;  %v884_v2 = vld [vmem:[%s1657_s7] sm:$0xff]  ;;  %s1308_s27 = scalar_lea.vmem %s1610_s22, 128  ;;  %s1383_s13 = smov [#allocation5]  }
  0x43   : > { %1198 = vmatpush3.bf16.msra.mxu0 %v1197_v17  ;;  %1143 = vmatprep.mubr.msk.f32.mxu0 %vm1380_vm0, %v1381_v1  ;;  %v1218_v4 = vpack.c.bf16 %v885_v3, %v884_v2  ;;  %v1089_v18 = vld [vmem:[%s1658_s8] ss:$0 sm:$0xff]  ;;  %p1309_p6 = scmp.ne.s32.totalorder %s1610_s22, %s1308_s27  ;;  %s1312_s23 = sshll.u32 %s1383_s13, 4  ;;  %s1313_s23 = int_to_ptr.vmem [resolvable:$false] %s1312_s23 }
  0x44   : > { %1205 = vmatprep.subr.bf16.mxu0 %v1379_v0  ;;  %s1314_s24 = scalar_lea.vmem %s1313_s23, 256  ;;  %p1315_p2 = scmp.lt.s32.totalorder %s1610_s22, %s1313_s23 }
  0x45   : > { %1204 = vmatpush3.bf16.msra.mxu1 %v1203_v32  ;;  %p1310_p10 = pnand %p1309_p6, %p1675_p9  ;;  %p1316_p3 = scmp.lt.s32.totalorder %s1314_s24, %s1308_s27 }
  0x46   : > { %1144 = vmatmul.mubr.msk.f32.vlgmr.msra.gmra.mrb[2].mxu0 %vm376_vm2, %v527_v20  ;;  %1211 = vmatprep.subr.bf16.mxu1 %v1379_v0 }
  0x47   : > { %1165 = vmatprep.mubr.msk.f32.mxu0 %vm1380_vm0, %v1381_v1  ;;  %1207 = vmatpush3.bf16.msra.mxu0 %v1206_v23  ;;  %p1311_p12 = pneg %p1310_p10  ;;  %p1317_p4 = por %p1316_p3, %p1315_p2 }
  0x48   : > { %1208 = vmatprep.subr.bf16.mxu0 %v1379_v0 }
  0x49   : > { %p1318_p7 = pnand %p1317_p4, %p1311_p12 }
  0x4b   : > { %1210 = vmatpush3.bf16.msra.mxu0 %v1209_v29 }
  0x4c   : > { %1217 = vmatprep.subr.bf16.mxu0 %v1379_v0 }
  0xbf   : > { %v614_v39 = vpop.permute.xlu0 %613 }
  0xc0   : > { %v622_v44 = vmul.f32 %v1084_v38, %v614_v39 }
 0x113   : > { %v517_v35 = vpop.f32.mrb[0].mxu1 }
 0x114   : > { %v1138_v37 = vpop.f32.mrb[1].mxu1 }
 0x115   : > { %v445_v33 = vpop.f32.mrb[0].mxu0 }
 0x116   : > { %v1131_v34 = vpop.f32.mrb[1].mxu0  ;;  %v518_v36 = vadd.f32 %v517_v35, %v445_v33 }
 0x119   : > { %v596_v40 = vpop.f32.mrb[2].mxu0 }
 0x11a   : > { %v600_v42 = vadd.f32 %v596_v40, %v518_v36  ;;  %v1145_v43 = vpop.f32.mrb[3].mxu0 }
 0x11c   : > { %v608_v45 = vadd.f32 %v1083_v41, %v600_v42 }
 0x11e   : > { %v623_v46 = vadd.f32 %v622_v44, %v608_v45 }
 0x120   : > { %vm624_vm4 = vcmp.gt.f32.partialorder %v623_v46, 0.0  ;;  %v625_v47 = vmul.f32 0.01, %v623_v46 }
 0x122   : > { %v626_v48 = vsel %vm624_vm4, %v623_v46, %v625_v47 }
 0x123   : > { %v628_v49 = vrot.slane %v626_v48, 7 }
 0x125   : > { %v631_v52 = vsel %vm630_vm5, 0.0, %v628_v49  ;;  %v632_v53 = vsel %vm630_vm5, %v628_v49, 0.0 }
 0x126   : > { %v644_v54 = vrot.slane %v631_v52, 1  ;;  %v645_v55 = vrot.slane %v632_v53, 1  ;;  %1166 = vmatmul.mubr.msk.f32.vlgmr.msra.gmra.mrb[4].mxu0 %vm647_vm6, %v631_v52  ;;  %v797_v61 = vrot.slane %v631_v52, 2  ;;  %v798_v62 = vrot.slane %v632_v53, 2 }
 0x127   : > { %1187 = vmatprep.mubr.msk.f32.mxu0 %vm1380_vm0, %v1381_v1  ;;  %1219 = vmatpush3.bf16.msra.mxu0 %v1218_v4 }
 0x128   : > { %v646_v59 = vsel %vm372_vm1, %v644_v54, %v645_v55  ;;  %v799_v63 = vsel %vm524_vm3, %v797_v61, %v798_v62  ;;  %1220 = vmatprep.subr.bf16.mxu0 %v1379_v0 }
 0x129   : > { %1155 = vmatmul.mubr.msk.f32.vlgmr.msra.gmra.mrb[2].mxu1 %vm647_vm6, %v646_v59 }
 0x12a   : > { %1213 = vmatpush3.bf16.msra.mxu1 %v1212_v56  ;;  %1176 = vmatprep.mubr.msk.f32.mxu1 %vm1380_vm0, %v1381_v1  ;;  %v886_v1 = vld [vmem:[%s1657_s7 + $0x10] sm:$0xff] }
 0x12b   : > { %1214 = vmatprep.subr.bf16.mxu1 %v1379_v0  ;;  %v1221_v6 = vpack.c.bf16 %v887_v5, %v886_v1  ;;  %v1088_v0 = vld [vmem:[%s1656_s6] ss:$0 sm:$0xff] }
 0x12d   : > { %1222 = vmatpush3.bf16.msra.mxu0 %v1221_v6 }
 0x12e   : > { %1216 = vmatpush3.bf16.msra.mxu1 %v1215_v60 }
 0x131   : > { %1177 = vmatmul.mubr.msk.f32.vlgmr.msra.gmra.mrb[4].mxu1 %vm647_vm6, %v799_v63 }
 0x1f9   : > { %v788_v7 = vpop.f32.mrb[4].mxu0 }
 0x1fa   : > { %v1167_v8 = vpop.f32.mrb[5].mxu0 }
 0x1fc   : > { %v716_v9 = vpop.f32.mrb[2].mxu1 }
 0x1fd   : > { %v789_v10 = vadd.f32 %v788_v7, %v716_v9  ;;  %v1156_v11 = vpop.f32.mrb[3].mxu1 }
 0x204   : > { %v868_v12 = vpop.f32.mrb[4].mxu1 }
 0x205   : > { %v872_v13 = vadd.f32 %v868_v12, %v789_v10  ;;  %v1178_v14 = vpop.f32.mrb[5].mxu1 }
 0x207   : > { %v880_v15 = vadd.f32 %v1088_v0, %v872_v13 }
 0x209   : > { %vm881_vm7 = vcmp.gt.f32.partialorder %v880_v15, 0.0  ;;  %v882_v16 = vmul.f32 0.01, %v880_v15 }
 0x20b   : > { %v883_v17 = vsel %vm881_vm7, %v880_v15, %v882_v16 }
 0x20c   : > { %1188 = vmatmul.mubr.msk.f32.vlgmr.msra.gmra.mrb[6].mxu0 %vm647_vm6, %v883_v17 }
 0x2df   : > { %v964_v19 = vpop.f32.mrb[6].mxu0 }
 0x2e0   : > { %v965_v20 = vadd.f32 %v1089_v18, %v964_v19  ;;  %v1189_v21 = vpop.f32.mrb[7].mxu0 }
 0x2e2   : > { %968 = vst [vmem:[%s353_s17] sm:$0xff] %v965_v20 }
 0x2e3   : > { %1321 = shalt.err (!%p1318_p7)
}
 0x2e4   : > { %s1322_s5 = scalar_lea.hbm %s1608_s28, 128  ;;  %s1326_s18 = scalar_lea.hbm %s1659_s9, 256 }
 0x2e5   : > { %p1323_p8 = scmp.ne.s32.totalorder %s1608_s28, %s1322_s5  ;;  %p1327_p1 = scmp.lt.u32.totalorder %s1608_s28, %s1659_s9 }
 0x2e6   : > { %p1328_p0 = scmp.lt.u32.totalorder %s1326_s18, %s1322_s5  ;;  %p1330_p6 = scmp.lt.u32.totalorder %s1322_s5, %s1608_s28 }
 0x2e7   : > { %p1324_p11 = pnand %p1323_p8, %p1675_p9 }
 0x2e8   : > { %p1329_p5 = por %p1328_p0, %p1327_p1 }
 0x2e9   : > { %p1325_p13 = pneg %p1324_p11 }
 0x2ea   : > { %p1331_p10 = por %p1330_p6, %p1329_p5 }
 0x2ec   : > { %p1332_p12 = pnand %p1331_p10, %p1325_p13 }
 0x2ee   : > { %1335 = shalt.err (!%p1332_p12)
}
 0x2ef   : > { %1227 = dma.vmem_to_hbm [thread:$0]  (%p1675_p9), %s1610_s22, 128, %s1608_s28, %s970_s21  }
 0x2f0 PF: > { %p1239_p2 = scmp.ge.s32.totalorder %s1374_s12, 2  ;;  %s995_s17 = sand.u32 1, %s1362_s30  }
 0x2f1   : > { %p1676_p3 = scmp.ne.s32.totalorder %s1668_s20, 0  ;;  %s996_s25 = scalar_lea.sflag [#allocation4], %s995_s17 }
 0x2f3   : > { %p1234_p4 = pnand %p1239_p2, %p1676_p3 }
 0x2f5   : > { %1357 = dma.done.wait (!%p1234_p4), %s996_s25, 128  }
 0x2f6   : > { %1359 = vsyncadd (!%p1234_p4), %s996_s25, 4294967168  ;;  %s1677_s26 = sld [smem:[#allocation8_spill]]  ;;  %s1678_s11 = sld [smem:[#allocation9_spill]] }
 0x2f7   : > { %p20_p7 = scmp.ge.s32.totalorder %s1459_s15, 4   ;;  %s1679_s30 = smov %s1366_s10 }
 0x2f8   : > { %s1681_s12 = smov %s1459_s15 }
 0x2f9   :  { %22 = sbr.rel (!%p20_p7) target bundleno = 6 (0x6), region = 103 }
 0x2fc   : > { %s1680_s10 = smov %s1677_s26 }
 0x300   :  { %1001 = vsyncpa [#allocation3], 1 }
 0x301   :  { %1003 = vsyncpa [#allocation3 + $0x1], 1 }
 0x302   :  { %1004 = vsyncpa [#allocation4], 1 }
 0x303   :  { %1006 = vsyncpa [#allocation4 + $0x1], 1 }

</bundles_post_ra>
